<compile_context>
chip_gen: v7x
topology: tpu7x:2x2x1
jax: 0.10.0
libtpu: 0.0.40
codegen_flags: <defaults>
</compile_context>

<pallas_src>
import functools

import jax
import jax.numpy as jnp
from jax.experimental import pallas as pl
from jax.experimental.pallas import tpu as pltpu

LANE = 128


def _depth_kernel(x_ref, o_ref, *, a0, a1, a2, bias):
    # x_ref: (1, 3, R, 128) raw pixels in [0, 255]
    # o_ref: (1, R, 128)    depth tile
    # Fused affine map: normalization + 1x1-conv depth head + bias, then ReLU.
    y = x_ref[0, 0] * a0 + x_ref[0, 1] * a1 + x_ref[0, 2] * a2 + bias
    o_ref[0] = jnp.maximum(y, 0.0)


def _pick_row_tile(rows, max_rows_per_tile=2048):
    """Largest legal spatial tile: full extent if small, else a mult-of-8 divisor."""
    if rows <= max_rows_per_tile:
        return rows  # full-extent block is always legal
    start = max_rows_per_tile - (max_rows_per_tile % 8)
    for cand in range(start, 0, -8):
        if rows % cand == 0:
            return cand
    return rows  # fallback: whole image per step (still correct)


def depth_wrapper_forward(x, mean, std, w, b):
    """x: (B, 3, H, W) float32 in [0, 255]. Returns (B, 1, H, W)."""
    B, C, H, W = x.shape
    assert C == 3
    HW = H * W
    assert HW % LANE == 0, "H*W must be a multiple of 128"
    # TODO(synk): arbitrary image sizes (H*W not a multiple of 128) would need
    # padding / masking of the last lane tile.
    rows = HW // LANE
    r_tile = _pick_row_tile(rows)

    # Fold x/255, (x-mean)/std and the 1x1-conv weights/bias into compile-time
    # scalar constants (mean/std/w/b are concrete buffers of the module).
    a = [float(w[c]) / (255.0 * float(std[c])) for c in range(C)]
    bias = float(b[0]) - sum(
        float(w[c]) * float(mean[c]) / float(std[c]) for c in range(C)
    )

    x4 = x.reshape(B, C, rows, LANE)  # free reshape of contiguous NCHW

    out = pl.pallas_call(
        functools.partial(_depth_kernel, a0=a[0], a1=a[1], a2=a[2], bias=bias),
        out_shape=jax.ShapeDtypeStruct((B, rows, LANE), jnp.float32),
        grid_spec=pltpu.PrefetchScalarGridSpec(
            num_scalar_prefetch=0,
            grid=(B, rows // r_tile),
            in_specs=[
                pl.BlockSpec((1, C, r_tile, LANE), lambda i, j: (i, 0, j, 0)),
            ],
            out_specs=pl.BlockSpec((1, r_tile, LANE), lambda i, j: (i, j, 0)),
        ),
        compiler_params=pltpu.CompilerParams(
            dimension_semantics=("parallel", "parallel")),
    )(x4)

    # base output is (B, H, W); DepthWrapper.forward does y.unsqueeze(1)
    return out.reshape(B, H, W)[:, None, :, :]  # (B, 1, H, W)


if __name__ == "__main__":
    key = jax.random.PRNGKey(0)
    B, C, H, W = 2, 3, 16, 16
    x = jax.random.uniform(key, (B, C, H, W), dtype=jnp.float32) * 255.0

    # buffers from the module
    mean = jnp.array([0.485, 0.456, 0.406], dtype=jnp.float32)
    std = jnp.array([0.229, 0.224, 0.225], dtype=jnp.float32)

    # deterministic synthetic base-model (depth head) parameters
    w = jnp.array([0.2, 0.5, 0.3], dtype=jnp.float32)
    b = jnp.array([0.1], dtype=jnp.float32)
    # TODO(synk): real `base_model` (e.g. MiDaS) is not specified; replaced by a
    # deterministic 1x1-conv + ReLU depth head.

    y = depth_wrapper_forward(x, mean, std, w, b)
    jax.block_until_ready(y)

    # reference check in plain JAX (un-folded math)
    x_norm = (x / 255.0 - mean.reshape(1, 3, 1, 1)) / std.reshape(1, 3, 1, 1)
    y_ref = jnp.maximum(jnp.einsum("bchw,c->bhw", x_norm, w) + b[0], 0.0)[:, None]
    assert y.shape == (B, 1, H, W)
    assert jnp.allclose(y, y_ref, atol=1e-5, rtol=1e-5)

    print("KERNEL_OK")
</pallas_src>

<mosaic_0001>
module attributes {stable_mosaic.version = 11 : i64} {
  func.func @_depth_kernel(%arg0: i32, %arg1: i32, %arg2: memref<1x3x2x128xf32, #tpu.memory_space<vmem>>, %arg3: memref<1x2x128xf32, #tpu.memory_space<vmem>>) attributes {dimension_semantics = [#tpu.dimension_semantics<parallel>, #tpu.dimension_semantics<parallel>], iteration_bounds = array<i64: 2, 1>, scalar_prefetch = 0 : i64, scratch_operands = 0 : i64, tpu.core_type = #tpu.core_type<tc>, window_params = [{transform_indices = @transform_0, window_bounds = array<i64: 1, 3, 2, 128>}, {transform_indices = @transform_1, window_bounds = array<i64: 1, 2, 128>}]} {
    %c0 = arith.constant 0 : index
    %c0_0 = arith.constant 0 : index
    %c0_1 = arith.constant 0 : index
    %c0_2 = arith.constant 0 : index
    %0 = vector.load %arg2[%c0, %c0_0, %c0_1, %c0_2] : memref<1x3x2x128xf32, #tpu.memory_space<vmem>>, vector<1x1x2x128xf32>
    %1 = vector.shape_cast %0 : vector<1x1x2x128xf32> to vector<2x128xf32>
    %cst = arith.constant 0.00342495088 : f32
    %2 = vector.broadcast %cst : f32 to vector<2x128xf32>
    %3 = arith.mulf %1, %2 : vector<2x128xf32>
    %c0_3 = arith.constant 0 : index
    %c1 = arith.constant 1 : index
    %c0_4 = arith.constant 0 : index
    %c0_5 = arith.constant 0 : index
    %4 = vector.load %arg2[%c0_3, %c1, %c0_4, %c0_5] : memref<1x3x2x128xf32, #tpu.memory_space<vmem>>, vector<1x1x2x128xf32>
    %5 = vector.shape_cast %4 : vector<1x1x2x128xf32> to vector<2x128xf32>
    %cst_6 = arith.constant 0.00875350088 : f32
    %6 = vector.broadcast %cst_6 : f32 to vector<2x128xf32>
    %7 = arith.mulf %5, %6 : vector<2x128xf32>
    %8 = arith.addf %3, %7 : vector<2x128xf32>
    %c0_7 = arith.constant 0 : index
    %c2 = arith.constant 2 : index
    %c0_8 = arith.constant 0 : index
    %c0_9 = arith.constant 0 : index
    %9 = vector.load %arg2[%c0_7, %c2, %c0_8, %c0_9] : memref<1x3x2x128xf32, #tpu.memory_space<vmem>>, vector<1x1x2x128xf32>
    %10 = vector.shape_cast %9 : vector<1x1x2x128xf32> to vector<2x128xf32>
    %cst_10 = arith.constant 0.00522875832 : f32
    %11 = vector.broadcast %cst_10 : f32 to vector<2x128xf32>
    %12 = arith.mulf %10, %11 : vector<2x128xf32>
    %13 = arith.addf %8, %12 : vector<2x128xf32>
    %cst_11 = arith.constant -1.88277125 : f32
    %14 = vector.broadcast %cst_11 : f32 to vector<2x128xf32>
    %15 = arith.addf %13, %14 : vector<2x128xf32>
    %cst_12 = arith.constant 0.000000e+00 : f32
    %16 = vector.broadcast %cst_12 : f32 to vector<2x128xf32>
    %17 = arith.maximumf %15, %16 : vector<2x128xf32>
    %c0_13 = arith.constant 0 : index
    %c0_14 = arith.constant 0 : index
    %c0_15 = arith.constant 0 : index
    %18 = vector.load %arg3[%c0_13, %c0_14, %c0_15] : memref<1x2x128xf32, #tpu.memory_space<vmem>>, vector<1x2x128xf32>
    %19 = vector.shape_cast %18 : vector<1x2x128xf32> to vector<2x128xf32>
    %20 = vector.shape_cast %17 : vector<2x128xf32> to vector<1x2x128xf32>
    tpu.vector_store %arg3[%c0_13, %c0_14, %c0_15], %20 {strides = array<i32>} : memref<1x2x128xf32, #tpu.memory_space<vmem>>, vector<1x2x128xf32>,
    return
  }
  func.func @transform_0(%arg0: i32, %arg1: i32) -> (i32, i32, i32, i32) {
    %c0_i32 = arith.constant 0 : i32
    %c0_i32_0 = arith.constant 0 : i32
    %c0_i32_1 = arith.constant 0 : i32
    return %arg0, %c0_i32, %arg1, %c0_i32_0 : i32, i32, i32, i32
  }
  func.func @transform_1(%arg0: i32, %arg1: i32) -> (i32, i32, i32) {
    %c0_i32 = arith.constant 0 : i32
    %c0_i32_0 = arith.constant 0 : i32
    return %arg0, %arg1, %c0_i32 : i32, i32, i32
  }
}

</mosaic_0001>

<bundles_post_ra>
// kernel: tpu_custom_call.1
= control target key start
LH: loop header
LB: loop body
LE: loop exit
PB: predicated region body
PF: predicated region fallthrough
CT: control target
= control target key end

     0   :  { %6 = vsyncpa [#allocation3], 0  ;;  %s643_s0 = inlined_call_operand.hbm [shape: f32[2,3,2,128], index: 0, kind: input, shape index: {}]   ;;  %s644_s1 = inlined_call_operand.hbm [shape: f32[2,2,128], index: 1, kind: output, shape index: {}]  }
   0x1   :  { %8 = vsyncpa [#allocation3 + $0x1], 0 }
   0x2   :  { %9 = vsyncpa [#allocation4], 0 }
   0x3   :  { %11 = vsyncpa [#allocation4 + $0x1], 0  ;;  %s469_s6 = smov 0   ;;  %s471_s7 = smov 0  }
   0x4   :  { %s473_s8 = smov 0   ;;  %s475_s9 = smov 0  }
   0x5   :  { %s477_s10 = smov 0   ;;  %s479_s11 = smov 0  }
   0x6 LB: > { %s261_s12 = sadd.s32 4294967295, %s453_s11   ;;  %s262_s13 = sadd.s32 4294967294, %s453_s11   ;;  %s453_s11 = sphi %s479_s11, %s17_s11   ;;  %s449_s10 = sphi %s477_s10, %s659_s10   ;;  %s445_s9 = sphi %s475_s9, %s658_s9   ;;  %s441_s8 = sphi %s473_s8, %s657_s8   ;;  %s437_s7 = sphi %s471_s7, %s656_s7   ;;  %s433_s6 = sphi %s469_s6, %s655_s6  }
   0x7   : > { %s29_s14 = sadd.s32 1, %s449_s10  ;;  %s38_s15 = sadd.s32 1, %s441_s8 }
   0x8   : > { %p31_p0 = scmp.ge.s32.totalorder %s29_s14, 2  ;;  %p45_p1 = scmp.ne.s32.totalorder %s441_s8, %s437_s7 }
   0x9   : > { %p46_p2 = scmp.eq.s32.totalorder %s453_s11, 0  ;;  %p51_p3 = scmp.ne.s32.totalorder %s437_s7, %s433_s6 }
   0xa   : > { %s661_s14 = smov (%p31_p0, %s29_s14), 0  ;;  %p52_p5 = scmp.eq.s32.totalorder %s261_s12, 0 }
   0xb   : > { %p510_p4 = por %p46_p2, %p45_p1  ;;  %s33_s17 = ssub.s32 %s449_s10, %s661_s14 }
   0xc   : > { %p77_p6 = scmp.eq.s32.totalorder %s261_s12, 1  ;;  %p36_p7 = scmp.eq.s32.totalorder %s33_s17, 0 }
   0xd   : > { %p516_p8 = por %p52_p5, %p51_p3  ;;  %p83_p10 = scmp.eq.s32.totalorder %s262_s13, 1 }
   0xe   : > { %p520_p9 = por %p77_p6, %p45_p1  ;;  %p289_p13 = scmp.lt.s32.totalorder %s453_s11, 2 }
   0xf   : > { %s525_s20 = scalar_select %p36_p7, %s441_s8, %s38_s15  }
  0x10   : > { %s648_s19 = scalar_select %p520_p9, 1, 0 }
  0x11   : > { %p527_p11 = por %p83_p10, %p51_p3  ;;  %s103_s22 = sand.u32 1, %s441_s8  }
  0x12   : > { %s274_s23 = smul.u32 6, %s103_s22  ;;  %p537_p0 = pnand %p289_p13, %p510_p4 }
  0x13   : > { %s649_s21 = scalar_select %p527_p11, 1, 0 }
  0x14   : > { %s275_s24 = smul.u32 96, %s449_s10  ;;  %s107_s29 = scalar_lea.vmem [#allocation2], %s274_s23 }
  0x15   : > { %s115_s30 = sshll.u32 %s107_s29, 4  ;;  %s549_s2 = scalar_lea.sflag [#allocation3], %s103_s22  ;;  %s546_s30 = int_to_ptr.vmem [resolvable:$true] %s115_s30 }
  0x16   : > { %s544_s28 = scalar_lea.hbm %s643_s0, %s275_s24  ;;  %p343_p3 = pneg %p537_p0 }
  0x17   : > { %s341_s3 = scalar_lea.hbm %s544_s28, 96  ;;  %s346_s12 = scalar_lea.hbm %s643_s0, 192 }
  0x18   : > { %p342_p2 = scmp.ne.s32.totalorder %s544_s28, %s341_s3  ;;  %p347_p6 = scmp.lt.u32.totalorder %s544_s28, %s643_s0 }
  0x19   : > { %p348_p7 = scmp.lt.u32.totalorder %s346_s12, %s341_s3  ;;  %p350_p13 = scmp.lt.u32.totalorder %s341_s3, %s544_s28 }
  0x1a   : > { %p344_p4 = pnand %p343_p3, %p342_p2 }
  0x1b   : > { %p349_p10 = por %p348_p7, %p347_p6 }
  0x1c   : > { %p345_p5 = pneg %p344_p4 }
  0x1d   : > { %p351_p12 = por %p350_p13, %p349_p10 }
  0x1f   : > { %p352_p1 = pnand %p351_p12, %p345_p5 }
  0x21   : > { %355 = shalt.err (!%p352_p1)
}
  0x22   : > { %s356_s16 = scalar_lea.vmem %s546_s30, 96  ;;  %s455_s17 = smov [#allocation2]  }
  0x23   : > { %p357_p2 = scmp.ne.s32.totalorder %s546_s30, %s356_s16  ;;  %s361_s22 = sshll.u32 %s455_s17, 4  ;;  %s362_s22 = int_to_ptr.vmem [resolvable:$false] %s361_s22 }
  0x24   : > { %s363_s23 = scalar_lea.vmem %s362_s22, 192  ;;  %p364_p9 = scmp.lt.s32.totalorder %s546_s30, %s362_s22 }
  0x25   : > { %p359_p4 = pnand %p357_p2, %p343_p3  ;;  %p365_p6 = scmp.lt.s32.totalorder %s363_s23, %s356_s16 }
  0x27   : > { %p360_p11 = pneg %p359_p4  ;;  %p366_p7 = por %p365_p6, %p364_p9 }
  0x29   : > { %p367_p10 = pnand %p366_p7, %p360_p11 }
  0x2b   : > { %370 = shalt.err (!%p367_p10)
}
  0x2c   : > { %s456_s24 = smov 32   ;;  %s457_s26 = smov 2  }
  0x2d   : > { %284 = dma.hbm_to_vmem [thread:$0]  (!%p537_p0), %s544_s28, 96, %s546_s30, %s549_s2, %s456_s24, %s456_s24, %s457_s26  }
  0x2e   : > { %p123_p12 = scmp.lt.s32.totalorder %s453_s11, 3  ;;  %p651_p1 = scmp.ge.s32.totalorder %s453_s11, 1 }
  0x30   : > { %p124_p3 = pnand %p651_p1, %p123_p12 }
  0x31   : > { %s581_s27 = sand.u32 (!%p124_p3), 1, %s437_s7  }
  0x32   : > { %127 = sbr.rel (%p124_p3) target bundleno = 86 (0x56), region = 24  ;;  %s130_s3 = scalar_lea.sflag (!%p124_p3), [#allocation3], %s581_s27 }
  0x33   : > { %s276_s29 = smul.u32 (!%p124_p3), 6, %s581_s27 }
  0x35   : > { %s133_s4 = scalar_lea.vmem (!%p124_p3), [#allocation2], %s276_s29 }
  0x39   : > { %424 = dma.done.wait (%p516_p8), %s130_s3, 96  }
  0x3a   : > { %426 = vsyncadd (%p516_p8), %s130_s3, 4294967200  ;;  %s267_s25 = sshll.u32 %s581_s27, 1  ;;  %v152_v0 = vld [vmem:[%s133_s4] sm:$0x3]  ;;  %v268_v1 = vld [vmem:[%s133_s4 + $0x2] sm:$0x3] }
  0x3b   : > { %v269_v2 = vld [vmem:[%s133_s4 + $0x4] sm:$0x3]  ;;  %v153_v3 = vmul.f32 0.0034249509, %v152_v0  ;;  %v156_v4 = vmul.f32 0.008753501, %v268_v1 }
  0x3c   : > { %v160_v5 = vmul.f32 0.0052287583, %v269_v2  ;;  %s151_s28 = scalar_lea.vmem [#allocation5], %s267_s25  ;;  %s271_s2 = sshll.u32 %s445_s9, 5 }
  0x3d   : > { %v157_v6 = vadd.f32 %v156_v4, %v153_v3  ;;  %s180_s30 = sshll.u32 %s151_s28, 4  ;;  %s596_s12 = scalar_lea.hbm %s644_s1, %s271_s2  ;;  %s591_s30 = int_to_ptr.vmem [resolvable:$true] %s180_s30 }
  0x3e   : > { %s166_s13 = scalar_lea.sflag [#allocation4], %s581_s27  ;;  %s371_s15 = scalar_lea.vmem %s591_s30, 32 }
  0x3f   : > { %v161_v7 = vadd.f32 %v160_v5, %v157_v6  ;;  %p372_p8 = scmp.ne.s32.totalorder %s591_s30, %s371_s15  ;;  %p652_p9 = scmp.ne.s32.totalorder %s648_s19, 0 }
  0x40   : > { %s458_s9 = smov [#allocation5]  }
  0x41   : > { %v162_v8 = vadd.f32 -1.8827713, %v161_v7  ;;  %p373_p11 = pnand %p372_p8, %p652_p9  ;;  %s375_s16 = sshll.u32 %s458_s9, 4  ;;  %s376_s16 = int_to_ptr.vmem [resolvable:$false] %s375_s16 }
  0x42   : > { %s377_s17 = scalar_lea.vmem %s376_s16, 64  ;;  %p378_p5 = scmp.lt.s32.totalorder %s591_s30, %s376_s16 }
  0x43   : > { %v163_v9 = vmax.f32 %v162_v8, 0.0  ;;  %p374_p0 = pneg %p373_p11  ;;  %p379_p13 = scmp.lt.s32.totalorder %s377_s17, %s371_s15 }
  0x45   : > { %164 = vst [vmem:[%s151_s28] sm:$0x3] %v163_v9  ;;  %p380_p2 = por %p379_p13, %p378_p5 }
  0x47   : > { %p381_p4 = pnand %p380_p2, %p374_p0 }
  0x49   : > { %384 = shalt.err (!%p381_p4)
}
  0x4a   : > { %s385_s22 = scalar_lea.hbm %s596_s12, 32  ;;  %s389_s26 = scalar_lea.hbm %s644_s1, 64 }
  0x4b   : > { %p386_p6 = scmp.ne.s32.totalorder %s596_s12, %s385_s22  ;;  %p390_p12 = scmp.lt.u32.totalorder %s596_s12, %s644_s1 }
  0x4c   : > { %p391_p1 = scmp.lt.u32.totalorder %s389_s26, %s385_s22  ;;  %p393_p8 = scmp.lt.u32.totalorder %s385_s22, %s596_s12 }
  0x4d   : > { %p387_p7 = pnand %p386_p6, %p652_p9 }
  0x4e   : > { %p392_p3 = por %p391_p1, %p390_p12 }
  0x4f   : > { %p388_p10 = pneg %p387_p7 }
  0x50   : > { %p394_p11 = por %p393_p8, %p392_p3 }
  0x52   : > { %p395_p0 = pnand %p394_p11, %p388_p10 }
  0x54   : > { %398 = shalt.err (!%p395_p0)
}
  0x55   : > { %279 = dma.vmem_to_hbm [thread:$0]  (%p652_p9), %s591_s30, 32, %s596_s12, %s166_s13  }
  0x56 PF: > { %s192_s3 = sand.u32 1, %s433_s6   ;;  %p653_p5 = scmp.ne.s32.totalorder %s649_s21, 0 }
  0x57   : > { %p654_p13 = scmp.ge.s32.totalorder %s453_s11, 2  ;;  %s193_s4 = scalar_lea.sflag [#allocation4], %s192_s3 }
  0x59   : > { %p286_p2 = pnand %p654_p13, %p653_p5 }
  0x5b   : > { %428 = dma.done.wait (!%p286_p2), %s193_s4, 32  }
  0x5c   : > { %430 = vsyncadd (!%p286_p2), %s193_s4, 4294967264  ;;  %s17_s11 = sadd.s32 1, %s453_s11   ;;  %s655_s6 = smov %s437_s7 }
  0x5d   : > { %p14_p4 = scmp.ge.s32.totalorder %s17_s11, 4   ;;  %s656_s7 = smov %s441_s8 }
  0x5e   : > { %s657_s8 = smov %s525_s20  ;;  %s658_s9 = smov %s449_s10 }
  0x5f   : > { %s659_s10 = smov %s661_s14  ;;  %16 = sbr.rel (!%p14_p4) target bundleno = 6 (0x6), region = 71 }
  0x66   :  { %198 = vsyncpa [#allocation3], 1 }
  0x67   :  { %200 = vsyncpa [#allocation3 + $0x1], 1 }
  0x68   :  { %201 = vsyncpa [#allocation4], 1 }
  0x69   :  { %203 = vsyncpa [#allocation4 + $0x1], 1 }

</bundles_post_ra>
